<compile_context>
chip_gen: v5e
topology: v5e:2x2
jax: 0.10.0
libtpu: 0.0.40
codegen_flags: <defaults>
</compile_context>

<pallas_src>
import functools

import jax
import jax.numpy as jnp
from jax import lax
from jax.experimental import pallas as pl
from jax.experimental.pallas import tpu as pltpu


def _round_up(n, m):
    return (n + m - 1) // m * m


def _boundary_masks(H, W, dil, cin_pad, nb):
    """(9*cin_pad, nb*H*W) f32, already broadcast over channels and tiled over
    the nb images fused into the lane axis.  Row k*cin_pad + ci at lane
    img*H*W + p is 1 iff tap k (dy,dx = k//3-1, k%3-1, scaled by dil) of a 3x3
    kernel at output position p samples an in-bounds pixel."""
    p = jnp.arange(H * W, dtype=jnp.int32)
    r, c = p // W, p % W
    rows = []
    for k in range(9):
        dy, dx = (k // 3 - 1) * dil, (k % 3 - 1) * dil
        ok = (r + dy >= 0) & (r + dy < H) & (c + dx >= 0) & (c + dx < W)
        rows.append(ok)
    m = jnp.stack(rows, axis=0).astype(jnp.float32)      # (9, HW)
    m = jnp.repeat(m, cin_pad, axis=0)                   # (9*cin_pad, HW)
    return jnp.tile(m, (1, nb))                          # (9*cin_pad, nb*HW)


def _pack_conv_weight(w, cin_pad, cout_pad):
    """(Cout, Cin, 3, 3) torch layout -> bf16 (cout_pad, 9*cin_pad).
    Column k*cin_pad + ci holds w[:, ci, k//3, k%3]; padded rows/cols are 0."""
    cout, cin, kh, kw = w.shape
    wk = jnp.transpose(w.astype(jnp.float32).reshape(cout, cin, kh * kw),
                       (0, 2, 1))                        # (Cout, 9, Cin)
    wk = jnp.pad(wk, ((0, cout_pad - cout), (0, 0), (0, cin_pad - cin)))
    return wk.reshape(cout_pad, kh * kw * cin_pad).astype(jnp.bfloat16)


def _pack_bias(b, cout_pad):
    return jnp.pad(b.astype(jnp.float32), (0, cout_pad - b.shape[0])).reshape(cout_pad, 1)


def _bottleneck_kernel(x_ref, m1_ref, m2_ref, w1_ref, b1_ref, w2_ref, b2_ref,
                       out_ref, xg_ref, *, W, C, dilation):
    x = x_ref[0]                                         # (cp, L) f32
    L = x.shape[-1]

    def conv3x3(xin, m_ref, w_ref, b_ref, dil):
        # xin: (cin_p, L) f32   m_ref: (9*cin_p, L) f32
        # w_ref: (cout_p, 9*cin_p) bf16   b_ref: (cout_p, 1) f32
        cin_p = xin.shape[0]
        for k in range(9):
            dy, dx = k // 3 - 1, k % 3 - 1
            s = (dy * W + dx) * dil                      # flat lane shift of tap k
            shift = (-s) % L
            # output lane q reads xin[:, q + s]; out-of-bounds (wrap) positions
            # are zeroed by the boundary mask (== zero padding).  In-bounds taps
            # never cross an image boundary of the fused lane axis.
            xs = xin if shift == 0 else pltpu.roll(xin, shift, axis=1)
            r0 = k * cin_p                               # static, 8-aligned
            xg_ref[r0:r0 + cin_p, :] = xs * m_ref[r0:r0 + cin_p, :]
        xg = xg_ref[0:9 * cin_p, :].astype(jnp.bfloat16)  # bf16 MXU operand
        return jnp.dot(w_ref[...], xg, preferred_element_type=jnp.float32) + b_ref[...]

    h = jnp.tanh(conv3x3(x, m1_ref, w1_ref, b1_ref, dilation))   # (cmid_p, L)
    h = conv3x3(h, m2_ref, w2_ref, b2_ref, 1)                    # (cout_p, L)
    out_ref[0] = jnp.tanh(x[:C, :] + h[:C, :]).astype(out_ref.dtype)


def bottleneck_block(x_nchw, params, *, dilation=1, stride=1, images_per_step=None):
    """Forward of BottleneckBlock. x_nchw: (N, C, H, W) f32 -> (N, C, H, W)."""
    if stride != 1:
        raise NotImplementedError("stride != 1 is not supported")

    N, C, H, W = x_nchw.shape
    HW = H * W
    cmid = params["w1"].shape[0]                         # out_channels * 2
    cout = params["w2"].shape[0]                         # out_channels
    assert cout == C, "residual add with downsample=None needs in_ch == out_ch"

    cp = _round_up(C, 8)
    cmid_p = _round_up(cmid, 8)
    cout_p = _round_up(cout, 8)

    # Batch fusion: nb images per grid step on the lane axis; keep >=2
    # "parallel" grid steps whenever N >= 2 so both v7x TensorCores are used.
    if images_per_step is None:
        images_per_step = N // 2 if (N >= 2 and N % 2 == 0) else 1
    nb = images_per_step
    assert N % nb == 0
    G = N // nb
    L = nb * HW

    x = x_nchw.reshape(N, C, HW).astype(jnp.float32)
    if cp != C:                                          # no-op when C % 8 == 0
        x = jnp.pad(x, ((0, 0), (0, cp - C), (0, 0)))
    if nb > 1:
        x = x.reshape(G, nb, cp, HW).transpose(0, 2, 1, 3)
    x = x.reshape(G, cp, L)

    m1 = _boundary_masks(H, W, dilation, cp, nb)         # (9*cp, L)
    if dilation == 1 and cmid_p == cp:
        m2 = m1                                          # identical masks
    else:
        m2 = _boundary_masks(H, W, 1, cmid_p, nb)        # (9*cmid_p, L)

    w1p = _pack_conv_weight(params["w1"], cp, cmid_p)    # bf16
    b1p = _pack_bias(params["b1"], cmid_p)               # f32
    w2p = _pack_conv_weight(params["w2"], cmid_p, cout_p)
    b2p = _pack_bias(params["b2"], cout_p)

    const = lambda g: (0, 0)
    out = pl.pallas_call(
        functools.partial(_bottleneck_kernel, W=W, C=C, dilation=dilation),
        out_shape=jax.ShapeDtypeStruct((G, C, L), jnp.float32),
        grid_spec=pltpu.PrefetchScalarGridSpec(
            num_scalar_prefetch=0,
            grid=(G,),
            in_specs=[
                pl.BlockSpec((1, cp, L), lambda g: (g, 0, 0)),
                pl.BlockSpec((9 * cp, L), const),
                pl.BlockSpec((9 * cmid_p, L), const),
                pl.BlockSpec((cmid_p, 9 * cp), const),
                pl.BlockSpec((cmid_p, 1), const),
                pl.BlockSpec((cout_p, 9 * cmid_p), const),
                pl.BlockSpec((cout_p, 1), const),
            ],
            out_specs=pl.BlockSpec((1, C, L), lambda g: (g, 0, 0)),
            scratch_shapes=[
                # one tap slab shared by both convs
                pltpu.VMEM((9 * max(cp, cmid_p), L), jnp.float32),
            ],
        ),
        compiler_params=pltpu.CompilerParams(
            dimension_semantics=("parallel",),
        ),
        cost_estimate=pl.CostEstimate(
            flops=2 * G * L * 9 * (cmid_p * cp + cout_p * cmid_p),
            transcendentals=G * L * (cmid_p + C),
            bytes_accessed=(4 * (G * cp * L + G * C * L + m1.size + m2.size
                                 + b1p.size + b2p.size)
                            + 2 * (w1p.size + w2p.size)),
        ),
    )(x, m1, m2, w1p, b1p, w2p, b2p)

    if nb > 1:
        out = out.reshape(G, C, nb, HW).transpose(0, 2, 1, 3)
    return out.reshape(N, C, H, W)


def _bottleneck_ref(x, params, dilation=1):
    """Pure-JAX reference (matches the PyTorch forward, f32 throughout)."""
    dn = ("NCHW", "OIHW", "NCHW")
    h = lax.conv_general_dilated(
        x, params["w1"], window_strides=(1, 1),
        padding=[(dilation, dilation), (dilation, dilation)],
        rhs_dilation=(dilation, dilation), dimension_numbers=dn)
    h = jnp.tanh(h + params["b1"].reshape(1, -1, 1, 1))
    h = lax.conv_general_dilated(
        h, params["w2"], window_strides=(1, 1),
        padding=[(1, 1), (1, 1)], dimension_numbers=dn)
    h = h + params["b2"].reshape(1, -1, 1, 1)
    return jnp.tanh(x + h)


def init_bottleneck_params(key, in_channels, out_channels):
    """Deterministic synthetic parameters in PyTorch (Cout, Cin, 3, 3) layout."""
    k1, k2, k3, k4 = jax.random.split(key, 4)
    cmid = out_channels * 2
    s1 = 1.0 / float((in_channels * 9) ** 0.5)
    s2 = 1.0 / float((cmid * 9) ** 0.5)
    return {
        "w1": jax.random.normal(k1, (cmid, in_channels, 3, 3), jnp.float32) * s1,
        "b1": jax.random.normal(k2, (cmid,), jnp.float32) * s1,
        "w2": jax.random.normal(k3, (out_channels, cmid, 3, 3), jnp.float32) * s2,
        "b2": jax.random.normal(k4, (out_channels,), jnp.float32) * s2,
    }


if __name__ == "__main__":
    key = jax.random.PRNGKey(0)
    kx, kp = jax.random.split(key)
    N, C, H, W = 2, 4, 16, 16
    x = jax.random.normal(kx, (N, C, H, W), jnp.float32)
    params = init_bottleneck_params(kp, in_channels=C, out_channels=C)

    out = jax.block_until_ready(bottleneck_block(x, params))
    ref = jax.block_until_ready(_bottleneck_ref(x, params))

    assert out.shape == (N, C, H, W), out.shape
    assert bool(jnp.all(jnp.isfinite(out)))
    assert bool(jnp.all(jnp.abs(out) <= 1.0))            # final tanh
    err = float(jnp.max(jnp.abs(out - ref)))
    # tolerance relaxed vs the f32 reference because the MXU operands are bf16
    assert err < 2.5e-2, f"max abs error vs pure-JAX reference = {err}"
    print("KERNEL_OK")
</pallas_src>

<mosaic_0001>
module attributes {stable_mosaic.version = 11 : i64} {
  func.func @_bottleneck_kernel(%arg0: i32, %arg1: memref<1x8x256xf32, #tpu.memory_space<vmem>>, %arg2: memref<72x256xf32, #tpu.memory_space<vmem>>, %arg3: memref<72x256xf32, #tpu.memory_space<vmem>>, %arg4: memref<8x72xbf16, #tpu.memory_space<vmem>>, %arg5: memref<8x1xf32, #tpu.memory_space<vmem>>, %arg6: memref<8x72xbf16, #tpu.memory_space<vmem>>, %arg7: memref<8x1xf32, #tpu.memory_space<vmem>>, %arg8: memref<1x4x256xf32, #tpu.memory_space<vmem>>, %arg9: memref<72x256xf32, #tpu.memory_space<vmem>>) attributes {dimension_semantics = [#tpu.dimension_semantics<parallel>], iteration_bounds = array<i64: 2>, scalar_prefetch = 0 : i64, scratch_operands = 1 : i64, tpu.core_type = #tpu.core_type<tc>, window_params = [{transform_indices = @transform_0, window_bounds = array<i64: 1, 8, 256>}, {pipeline_mode = #tpu.pipeline_mode<synchronous>, transform_indices = @transform_1, window_bounds = array<i64: 72, 256>}, {pipeline_mode = #tpu.pipeline_mode<synchronous>, transform_indices = @transform_2, window_bounds = array<i64: 72, 256>}, {pipeline_mode = #tpu.pipeline_mode<synchronous>, transform_indices = @transform_3, window_bounds = array<i64: 8, 72>}, {pipeline_mode = #tpu.pipeline_mode<synchronous>, transform_indices = @transform_4, window_bounds = array<i64: 8, 1>}, {pipeline_mode = #tpu.pipeline_mode<synchronous>, transform_indices = @transform_5, window_bounds = array<i64: 8, 72>}, {pipeline_mode = #tpu.pipeline_mode<synchronous>, transform_indices = @transform_6, window_bounds = array<i64: 8, 1>}, {transform_indices = @transform_7, window_bounds = array<i64: 1, 4, 256>}]} {
    %c0 = arith.constant 0 : index
    %c0_0 = arith.constant 0 : index
    %c0_1 = arith.constant 0 : index
    %0 = vector.load %arg1[%c0, %c0_0, %c0_1] : memref<1x8x256xf32, #tpu.memory_space<vmem>>, vector<1x8x256xf32>
    %1 = vector.shape_cast %0 : vector<1x8x256xf32> to vector<8x256xf32>
    %c17_i32 = arith.constant 17 : i32
    %2 = tpu.dynamic_rotate %1 by %c17_i32 dim 1 : vector<8x256xf32>, i32 -> vector<8x256xf32>
    %c0_2 = arith.constant 0 : index
    %c0_3 = arith.constant 0 : index
    %3 = vector.load %arg2[%c0_2, %c0_3] : memref<72x256xf32, #tpu.memory_space<vmem>>, vector<8x256xf32>
    %4 = arith.mulf %2, %3 : vector<8x256xf32>
    %c0_4 = arith.constant 0 : index
    %c0_5 = arith.constant 0 : index
    %5 = vector.load %arg9[%c0_4, %c0_5] : memref<72x256xf32, #tpu.memory_space<vmem>>, vector<8x256xf32>
    tpu.vector_store %arg9[%c0_4, %c0_5], %4 {strides = array<i32>} : memref<72x256xf32, #tpu.memory_space<vmem>>, vector<8x256xf32>,
    %c16_i32 = arith.constant 16 : i32
    %6 = tpu.dynamic_rotate %1 by %c16_i32 dim 1 : vector<8x256xf32>, i32 -> vector<8x256xf32>
    %c8 = arith.constant 8 : index
    %c0_6 = arith.constant 0 : index
    %7 = vector.load %arg2[%c8, %c0_6] : memref<72x256xf32, #tpu.memory_space<vmem>>, vector<8x256xf32>
    %8 = arith.mulf %6, %7 : vector<8x256xf32>
    %c8_7 = arith.constant 8 : index
    %c0_8 = arith.constant 0 : index
    %9 = vector.load %arg9[%c8_7, %c0_8] : memref<72x256xf32, #tpu.memory_space<vmem>>, vector<8x256xf32>
    tpu.vector_store %arg9[%c8_7, %c0_8], %8 {strides = array<i32>} : memref<72x256xf32, #tpu.memory_space<vmem>>, vector<8x256xf32>,
    %c15_i32 = arith.constant 15 : i32
    %10 = tpu.dynamic_rotate %1 by %c15_i32 dim 1 : vector<8x256xf32>, i32 -> vector<8x256xf32>
    %c16 = arith.constant 16 : index
    %c0_9 = arith.constant 0 : index
    %11 = vector.load %arg2[%c16, %c0_9] : memref<72x256xf32, #tpu.memory_space<vmem>>, vector<8x256xf32>
    %12 = arith.mulf %10, %11 : vector<8x256xf32>
    %c16_10 = arith.constant 16 : index
    %c0_11 = arith.constant 0 : index
    %13 = vector.load %arg9[%c16_10, %c0_11] : memref<72x256xf32, #tpu.memory_space<vmem>>, vector<8x256xf32>
    tpu.vector_store %arg9[%c16_10, %c0_11], %12 {strides = array<i32>} : memref<72x256xf32, #tpu.memory_space<vmem>>, vector<8x256xf32>,
    %c1_i32 = arith.constant 1 : i32
    %14 = tpu.dynamic_rotate %1 by %c1_i32 dim 1 : vector<8x256xf32>, i32 -> vector<8x256xf32>
    %c24 = arith.constant 24 : index
    %c0_12 = arith.constant 0 : index
    %15 = vector.load %arg2[%c24, %c0_12] : memref<72x256xf32, #tpu.memory_space<vmem>>, vector<8x256xf32>
    %16 = arith.mulf %14, %15 : vector<8x256xf32>
    %c24_13 = arith.constant 24 : index
    %c0_14 = arith.constant 0 : index
    %17 = vector.load %arg9[%c24_13, %c0_14] : memref<72x256xf32, #tpu.memory_space<vmem>>, vector<8x256xf32>
    tpu.vector_store %arg9[%c24_13, %c0_14], %16 {strides = array<i32>} : memref<72x256xf32, #tpu.memory_space<vmem>>, vector<8x256xf32>,
    %c32 = arith.constant 32 : index
    %c0_15 = arith.constant 0 : index
    %18 = vector.load %arg2[%c32, %c0_15] : memref<72x256xf32, #tpu.memory_space<vmem>>, vector<8x256xf32>
    %19 = arith.mulf %1, %18 : vector<8x256xf32>
    %c32_16 = arith.constant 32 : index
    %c0_17 = arith.constant 0 : index
    %20 = vector.load %arg9[%c32_16, %c0_17] : memref<72x256xf32, #tpu.memory_space<vmem>>, vector<8x256xf32>
    tpu.vector_store %arg9[%c32_16, %c0_17], %19 {strides = array<i32>} : memref<72x256xf32, #tpu.memory_space<vmem>>, vector<8x256xf32>,
    %c255_i32 = arith.constant 255 : i32
    %21 = tpu.dynamic_rotate %1 by %c255_i32 dim 1 : vector<8x256xf32>, i32 -> vector<8x256xf32>
    %c40 = arith.constant 40 : index
    %c0_18 = arith.constant 0 : index
    %22 = vector.load %arg2[%c40, %c0_18] : memref<72x256xf32, #tpu.memory_space<vmem>>, vector<8x256xf32>
    %23 = arith.mulf %21, %22 : vector<8x256xf32>
    %c40_19 = arith.constant 40 : index
    %c0_20 = arith.constant 0 : index
    %24 = vector.load %arg9[%c40_19, %c0_20] : memref<72x256xf32, #tpu.memory_space<vmem>>, vector<8x256xf32>
    tpu.vector_store %arg9[%c40_19, %c0_20], %23 {strides = array<i32>} : memref<72x256xf32, #tpu.memory_space<vmem>>, vector<8x256xf32>,
    %c241_i32 = arith.constant 241 : i32
    %25 = tpu.dynamic_rotate %1 by %c241_i32 dim 1 : vector<8x256xf32>, i32 -> vector<8x256xf32>
    %c48 = arith.constant 48 : index
    %c0_21 = arith.constant 0 : index
    %26 = vector.load %arg2[%c48, %c0_21] : memref<72x256xf32, #tpu.memory_space<vmem>>, vector<8x256xf32>
    %27 = arith.mulf %25, %26 : vector<8x256xf32>
    %c48_22 = arith.constant 48 : index
    %c0_23 = arith.constant 0 : index
    %28 = vector.load %arg9[%c48_22, %c0_23] : memref<72x256xf32, #tpu.memory_space<vmem>>, vector<8x256xf32>
    tpu.vector_store %arg9[%c48_22, %c0_23], %27 {strides = array<i32>} : memref<72x256xf32, #tpu.memory_space<vmem>>, vector<8x256xf32>,
    %c240_i32 = arith.constant 240 : i32
    %29 = tpu.dynamic_rotate %1 by %c240_i32 dim 1 : vector<8x256xf32>, i32 -> vector<8x256xf32>
    %c56 = arith.constant 56 : index
    %c0_24 = arith.constant 0 : index
    %30 = vector.load %arg2[%c56, %c0_24] : memref<72x256xf32, #tpu.memory_space<vmem>>, vector<8x256xf32>
    %31 = arith.mulf %29, %30 : vector<8x256xf32>
    %c56_25 = arith.constant 56 : index
    %c0_26 = arith.constant 0 : index
    %32 = vector.load %arg9[%c56_25, %c0_26] : memref<72x256xf32, #tpu.memory_space<vmem>>, vector<8x256xf32>
    tpu.vector_store %arg9[%c56_25, %c0_26], %31 {strides = array<i32>} : memref<72x256xf32, #tpu.memory_space<vmem>>, vector<8x256xf32>,
    %c239_i32 = arith.constant 239 : i32
    %33 = tpu.dynamic_rotate %1 by %c239_i32 dim 1 : vector<8x256xf32>, i32 -> vector<8x256xf32>
    %c64 = arith.constant 64 : index
    %c0_27 = arith.constant 0 : index
    %34 = vector.load %arg2[%c64, %c0_27] : memref<72x256xf32, #tpu.memory_space<vmem>>, vector<8x256xf32>
    %35 = arith.mulf %33, %34 : vector<8x256xf32>
    %c64_28 = arith.constant 64 : index
    %c0_29 = arith.constant 0 : index
    %36 = vector.load %arg9[%c64_28, %c0_29] : memref<72x256xf32, #tpu.memory_space<vmem>>, vector<8x256xf32>
    tpu.vector_store %arg9[%c64_28, %c0_29], %35 {strides = array<i32>} : memref<72x256xf32, #tpu.memory_space<vmem>>, vector<8x256xf32>,
    %c0_30 = arith.constant 0 : index
    %c0_31 = arith.constant 0 : index
    %37 = vector.load %arg9[%c0_30, %c0_31] : memref<72x256xf32, #tpu.memory_space<vmem>>, vector<72x256xf32>
    %38 = arith.truncf %37 : vector<72x256xf32> to vector<72x256xbf16>
    %c0_32 = arith.constant 0 : index
    %c0_33 = arith.constant 0 : index
    %39 = vector.load %arg4[%c0_32, %c0_33] : memref<8x72xbf16, #tpu.memory_space<vmem>>, vector<8x72xbf16>
    %cst = arith.constant dense<0.000000e+00> : vector<8x256xf32>
    %40 = tpu.matmul %39, %38, %cst {dimension_numbers = #tpu.dot_dimension_numbers<[1], [0], [0], [1], [0, 0, 1, 1], [], []>} : vector<8x72xbf16>, vector<72x256xbf16>, vector<8x256xf32> -> vector<8x256xf32>
    %c0_34 = arith.constant 0 : index
    %c0_35 = arith.constant 0 : index
    %41 = vector.load %arg5[%c0_34, %c0_35] : memref<8x1xf32, #tpu.memory_space<vmem>>, vector<8x1xf32>
    %42 = vector.broadcast %41 : vector<8x1xf32> to vector<8x256xf32>
    %43 = arith.addf %40, %42 : vector<8x256xf32>
    %44 = math.tanh %43 : vector<8x256xf32>
    %c17_i32_36 = arith.constant 17 : i32
    %45 = tpu.dynamic_rotate %44 by %c17_i32_36 dim 1 : vector<8x256xf32>, i32 -> vector<8x256xf32>
    %c0_37 = arith.constant 0 : index
    %c0_38 = arith.constant 0 : index
    %46 = vector.load %arg3[%c0_37, %c0_38] : memref<72x256xf32, #tpu.memory_space<vmem>>, vector<8x256xf32>
    %47 = arith.mulf %45, %46 : vector<8x256xf32>
    %c0_39 = arith.constant 0 : index
    %c0_40 = arith.constant 0 : index
    %48 = vector.load %arg9[%c0_39, %c0_40] : memref<72x256xf32, #tpu.memory_space<vmem>>, vector<8x256xf32>
    tpu.vector_store %arg9[%c0_39, %c0_40], %47 {strides = array<i32>} : memref<72x256xf32, #tpu.memory_space<vmem>>, vector<8x256xf32>,
    %c16_i32_41 = arith.constant 16 : i32
    %49 = tpu.dynamic_rotate %44 by %c16_i32_41 dim 1 : vector<8x256xf32>, i32 -> vector<8x256xf32>
    %c8_42 = arith.constant 8 : index
    %c0_43 = arith.constant 0 : index
    %50 = vector.load %arg3[%c8_42, %c0_43] : memref<72x256xf32, #tpu.memory_space<vmem>>, vector<8x256xf32>
    %51 = arith.mulf %49, %50 : vector<8x256xf32>
    %c8_44 = arith.constant 8 : index
    %c0_45 = arith.constant 0 : index
    %52 = vector.load %arg9[%c8_44, %c0_45] : memref<72x256xf32, #tpu.memory_space<vmem>>, vector<8x256xf32>
    tpu.vector_store %arg9[%c8_44, %c0_45], %51 {strides = array<i32>} : memref<72x256xf32, #tpu.memory_space<vmem>>, vector<8x256xf32>,
    %c15_i32_46 = arith.constant 15 : i32
    %53 = tpu.dynamic_rotate %44 by %c15_i32_46 dim 1 : vector<8x256xf32>, i32 -> vector<8x256xf32>
    %c16_47 = arith.constant 16 : index
    %c0_48 = arith.constant 0 : index
    %54 = vector.load %arg3[%c16_47, %c0_48] : memref<72x256xf32, #tpu.memory_space<vmem>>, vector<8x256xf32>
    %55 = arith.mulf %53, %54 : vector<8x256xf32>
    %c16_49 = arith.constant 16 : index
    %c0_50 = arith.constant 0 : index
    %56 = vector.load %arg9[%c16_49, %c0_50] : memref<72x256xf32, #tpu.memory_space<vmem>>, vector<8x256xf32>
    tpu.vector_store %arg9[%c16_49, %c0_50], %55 {strides = array<i32>} : memref<72x256xf32, #tpu.memory_space<vmem>>, vector<8x256xf32>,
    %c1_i32_51 = arith.constant 1 : i32
    %57 = tpu.dynamic_rotate %44 by %c1_i32_51 dim 1 : vector<8x256xf32>, i32 -> vector<8x256xf32>
    %c24_52 = arith.constant 24 : index
    %c0_53 = arith.constant 0 : index
    %58 = vector.load %arg3[%c24_52, %c0_53] : memref<72x256xf32, #tpu.memory_space<vmem>>, vector<8x256xf32>
    %59 = arith.mulf %57, %58 : vector<8x256xf32>
    %c24_54 = arith.constant 24 : index
    %c0_55 = arith.constant 0 : index
    %60 = vector.load %arg9[%c24_54, %c0_55] : memref<72x256xf32, #tpu.memory_space<vmem>>, vector<8x256xf32>
    tpu.vector_store %arg9[%c24_54, %c0_55], %59 {strides = array<i32>} : memref<72x256xf32, #tpu.memory_space<vmem>>, vector<8x256xf32>,
    %c32_56 = arith.constant 32 : index
    %c0_57 = arith.constant 0 : index
    %61 = vector.load %arg3[%c32_56, %c0_57] : memref<72x256xf32, #tpu.memory_space<vmem>>, vector<8x256xf32>
    %62 = arith.mulf %44, %61 : vector<8x256xf32>
    %c32_58 = arith.constant 32 : index
    %c0_59 = arith.constant 0 : index
    %63 = vector.load %arg9[%c32_58, %c0_59] : memref<72x256xf32, #tpu.memory_space<vmem>>, vector<8x256xf32>
    tpu.vector_store %arg9[%c32_58, %c0_59], %62 {strides = array<i32>} : memref<72x256xf32, #tpu.memory_space<vmem>>, vector<8x256xf32>,
    %c255_i32_60 = arith.constant 255 : i32
    %64 = tpu.dynamic_rotate %44 by %c255_i32_60 dim 1 : vector<8x256xf32>, i32 -> vector<8x256xf32>
    %c40_61 = arith.constant 40 : index
    %c0_62 = arith.constant 0 : index
    %65 = vector.load %arg3[%c40_61, %c0_62] : memref<72x256xf32, #tpu.memory_space<vmem>>, vector<8x256xf32>
    %66 = arith.mulf %64, %65 : vector<8x256xf32>
    %c40_63 = arith.constant 40 : index
    %c0_64 = arith.constant 0 : index
    %67 = vector.load %arg9[%c40_63, %c0_64] : memref<72x256xf32, #tpu.memory_space<vmem>>, vector<8x256xf32>
    tpu.vector_store %arg9[%c40_63, %c0_64], %66 {strides = array<i32>} : memref<72x256xf32, #tpu.memory_space<vmem>>, vector<8x256xf32>,
    %c241_i32_65 = arith.constant 241 : i32
    %68 = tpu.dynamic_rotate %44 by %c241_i32_65 dim 1 : vector<8x256xf32>, i32 -> vector<8x256xf32>
    %c48_66 = arith.constant 48 : index
    %c0_67 = arith.constant 0 : index
    %69 = vector.load %arg3[%c48_66, %c0_67] : memref<72x256xf32, #tpu.memory_space<vmem>>, vector<8x256xf32>
    %70 = arith.mulf %68, %69 : vector<8x256xf32>
    %c48_68 = arith.constant 48 : index
    %c0_69 = arith.constant 0 : index
    %71 = vector.load %arg9[%c48_68, %c0_69] : memref<72x256xf32, #tpu.memory_space<vmem>>, vector<8x256xf32>
    tpu.vector_store %arg9[%c48_68, %c0_69], %70 {strides = array<i32>} : memref<72x256xf32, #tpu.memory_space<vmem>>, vector<8x256xf32>,
    %c240_i32_70 = arith.constant 240 : i32
    %72 = tpu.dynamic_rotate %44 by %c240_i32_70 dim 1 : vector<8x256xf32>, i32 -> vector<8x256xf32>
    %c56_71 = arith.constant 56 : index
    %c0_72 = arith.constant 0 : index
    %73 = vector.load %arg3[%c56_71, %c0_72] : memref<72x256xf32, #tpu.memory_space<vmem>>, vector<8x256xf32>
    %74 = arith.mulf %72, %73 : vector<8x256xf32>
    %c56_73 = arith.constant 56 : index
    %c0_74 = arith.constant 0 : index
    %75 = vector.load %arg9[%c56_73, %c0_74] : memref<72x256xf32, #tpu.memory_space<vmem>>, vector<8x256xf32>
    tpu.vector_store %arg9[%c56_73, %c0_74], %74 {strides = array<i32>} : memref<72x256xf32, #tpu.memory_space<vmem>>, vector<8x256xf32>,
    %c239_i32_75 = arith.constant 239 : i32
    %76 = tpu.dynamic_rotate %44 by %c239_i32_75 dim 1 : vector<8x256xf32>, i32 -> vector<8x256xf32>
    %c64_76 = arith.constant 64 : index
    %c0_77 = arith.constant 0 : index
    %77 = vector.load %arg3[%c64_76, %c0_77] : memref<72x256xf32, #tpu.memory_space<vmem>>, vector<8x256xf32>
    %78 = arith.mulf %76, %77 : vector<8x256xf32>
    %c64_78 = arith.constant 64 : index
    %c0_79 = arith.constant 0 : index
    %79 = vector.load %arg9[%c64_78, %c0_79] : memref<72x256xf32, #tpu.memory_space<vmem>>, vector<8x256xf32>
    tpu.vector_store %arg9[%c64_78, %c0_79], %78 {strides = array<i32>} : memref<72x256xf32, #tpu.memory_space<vmem>>, vector<8x256xf32>,
    %c0_80 = arith.constant 0 : index
    %c0_81 = arith.constant 0 : index
    %80 = vector.load %arg9[%c0_80, %c0_81] : memref<72x256xf32, #tpu.memory_space<vmem>>, vector<72x256xf32>
    %81 = arith.truncf %80 : vector<72x256xf32> to vector<72x256xbf16>
    %c0_82 = arith.constant 0 : index
    %c0_83 = arith.constant 0 : index
    %82 = vector.load %arg6[%c0_82, %c0_83] : memref<8x72xbf16, #tpu.memory_space<vmem>>, vector<8x72xbf16>
    %cst_84 = arith.constant dense<0.000000e+00> : vector<8x256xf32>
    %83 = tpu.matmul %82, %81, %cst_84 {dimension_numbers = #tpu.dot_dimension_numbers<[1], [0], [0], [1], [0, 0, 1, 1], [], []>} : vector<8x72xbf16>, vector<72x256xbf16>, vector<8x256xf32> -> vector<8x256xf32>
    %c0_85 = arith.constant 0 : index
    %c0_86 = arith.constant 0 : index
    %84 = vector.load %arg7[%c0_85, %c0_86] : memref<8x1xf32, #tpu.memory_space<vmem>>, vector<8x1xf32>
    %85 = vector.broadcast %84 : vector<8x1xf32> to vector<8x256xf32>
    %86 = arith.addf %83, %85 : vector<8x256xf32>
    %87 = vector.extract_strided_slice %1 {offsets = [0, 0], sizes = [4, 256], strides = [1, 1]} : vector<8x256xf32> to vector<4x256xf32>
    %88 = vector.extract_strided_slice %86 {offsets = [0, 0], sizes = [4, 256], strides = [1, 1]} : vector<8x256xf32> to vector<4x256xf32>
    %89 = arith.addf %87, %88 : vector<4x256xf32>
    %90 = math.tanh %89 : vector<4x256xf32>
    %c0_87 = arith.constant 0 : index
    %c0_88 = arith.constant 0 : index
    %c0_89 = arith.constant 0 : index
    %91 = vector.load %arg8[%c0_87, %c0_88, %c0_89] : memref<1x4x256xf32, #tpu.memory_space<vmem>>, vector<1x4x256xf32>
    %92 = vector.shape_cast %91 : vector<1x4x256xf32> to vector<4x256xf32>
    %93 = vector.shape_cast %90 : vector<4x256xf32> to vector<1x4x256xf32>
    tpu.vector_store %arg8[%c0_87, %c0_88, %c0_89], %93 {strides = array<i32>} : memref<1x4x256xf32, #tpu.memory_space<vmem>>, vector<1x4x256xf32>,
    return
  }
  func.func @transform_0(%arg0: i32) -> (i32, i32, i32) {
    %c0_i32 = arith.constant 0 : i32
    %c0_i32_0 = arith.constant 0 : i32
    %c0_i32_1 = arith.constant 0 : i32
    return %arg0, %c0_i32, %c0_i32_0 : i32, i32, i32
  }
  func.func @transform_1(%arg0: i32) -> (i32, i32) {
    %c0_i32 = arith.constant 0 : i32
    %c0_i32_0 = arith.constant 0 : i32
    %c0_i32_1 = arith.constant 0 : i32
    return %c0_i32, %c0_i32_0 : i32, i32
  }
  func.func @transform_2(%arg0: i32) -> (i32, i32) {
    %c0_i32 = arith.constant 0 : i32
    %c0_i32_0 = arith.constant 0 : i32
    %c0_i32_1 = arith.constant 0 : i32
    return %c0_i32, %c0_i32_0 : i32, i32
  }
  func.func @transform_3(%arg0: i32) -> (i32, i32) {
    %c0_i32 = arith.constant 0 : i32
    %c0_i32_0 = arith.constant 0 : i32
    %c0_i32_1 = arith.constant 0 : i32
    return %c0_i32, %c0_i32_0 : i32, i32
  }
  func.func @transform_4(%arg0: i32) -> (i32, i32) {
    %c0_i32 = arith.constant 0 : i32
    %c0_i32_0 = arith.constant 0 : i32
    %c0_i32_1 = arith.constant 0 : i32
    return %c0_i32, %c0_i32_0 : i32, i32
  }
  func.func @transform_5(%arg0: i32) -> (i32, i32) {
    %c0_i32 = arith.constant 0 : i32
    %c0_i32_0 = arith.constant 0 : i32
    %c0_i32_1 = arith.constant 0 : i32
    return %c0_i32, %c0_i32_0 : i32, i32
  }
  func.func @transform_6(%arg0: i32) -> (i32, i32) {
    %c0_i32 = arith.constant 0 : i32
    %c0_i32_0 = arith.constant 0 : i32
    %c0_i32_1 = arith.constant 0 : i32
    return %c0_i32, %c0_i32_0 : i32, i32
  }
  func.func @transform_7(%arg0: i32) -> (i32, i32, i32) {
    %c0_i32 = arith.constant 0 : i32
    %c0_i32_0 = arith.constant 0 : i32
    %c0_i32_1 = arith.constant 0 : i32
    return %arg0, %c0_i32, %c0_i32_0 : i32, i32, i32
  }
}

</mosaic_0001>

<bundles_post_ra>
// kernel: tpu_custom_call.1
= control target key start
LH: loop header
LB: loop body
LE: loop exit
PB: predicated region body
PF: predicated region fallthrough
CT: control target
= control target key end

     0   :  { %s1453_s0 = inlined_call_operand.hbm [shape: f32[2,8,256], index: 0, kind: input, shape index: {}]   ;;  %s1454_s1 = inlined_call_operand.hbm [shape: f32[72,256], index: 1, kind: input, shape index: {}]   ;;  %s1455_s2 = inlined_call_operand.hbm [shape: f32[72,256], index: 2, kind: input, shape index: {}]   ;;  %s1456_s3 = inlined_call_operand.vmem [shape: bf16[8,72], index: 3, kind: input, shape index: {}]   ;;  %s1457_s4 = inlined_call_operand.vmem [shape: f32[8,1], index: 4, kind: input, shape index: {}]   ;;  %s1458_s5 = inlined_call_operand.vmem [shape: bf16[8,72], index: 5, kind: input, shape index: {}]   ;;  %s1459_s6 = inlined_call_operand.vmem [shape: f32[8,1], index: 6, kind: input, shape index: {}]   ;;  %s1460_s7 = inlined_call_operand.hbm [shape: f32[2,4,256], index: 7, kind: output, shape index: {}]  }
   0x1   :  { %1461 = sst [smem:[#allocation13_spill]] %s1454_s1 }
   0x2   :  { %1462 = sst [smem:[#allocation14_spill]] %s1455_s2 }
   0x3   :  { %12 = vsyncpa [#allocation4], 0 }
   0x4   :  { %14 = vsyncpa [#allocation4 + $0x1], 0 }
   0x5   :  { %15 = vsyncpa [#allocation7], 0 }
   0x6   :  { %16 = vsyncpa [#allocation5], 0 }
   0x7   :  { %18 = vsyncpa [#allocation5 + $0x1], 0  ;;  %s1134_s24 = smov 0   ;;  %s1136_s25 = smov 0  }
   0x8   :  { %s1138_s26 = smov 0   ;;  %s1140_s27 = smov 0  }
   0x9 LB: > { %s1463_s1 = sld [smem:[#allocation13_spill]]  ;;  %s1158_s8 = sadd.s32 4294967295, %s1079_s27   ;;  %s1079_s27 = sphi %s1140_s27, %s1475_s27   ;;  %s1075_s26 = sphi %s1138_s26, %s1474_s26   ;;  %s1071_s25 = sphi %s1136_s25, %s1473_s25   ;;  %s1067_s24 = sphi %s1134_s24, %s1472_s24  }
   0xa   : > { %p808_p0 = scmp.ge.s32.totalorder %s1079_s27, 1  ;;  %p45_p1 = scmp.eq.s32.totalorder %s1158_s8, 0 }
   0xb   : > { %p207_p2 = scmp.lt.s32.totalorder %s1079_s27, 3  ;;  %s1081_s10 = smov [#allocation6]  }
   0xc   : > { %s220_s11 = sshll.u32 %s1081_s10, 4  ;;  %s1465_s2 = sld [smem:[#allocation14_spill]]  ;;  %s221_s11 = int_to_ptr.vmem [resolvable:$true] %s220_s11 }
   0xd   : > { %p1163_p3 = pnand %p808_p0, %p207_p2  ;;  %s1082_s15 = smov [#allocation8]  }
   0xe   : > { %s234_s16 = sshll.u32 %s1082_s15, 4  ;;  %s1083_s17 = smov 256   ;;  %s235_s16 = int_to_ptr.vmem [resolvable:$true] %s234_s16 }
   0xf   : > { %s218_s30 = sshll.u32 %s1463_s1, 4  ;;  %p843_p4 = pneg %p1163_p3  ;;  %s219_s30 = int_to_ptr.hbm [resolvable:$true] %s218_s30 }
  0x10   : > { %s1084_s18 = smov 16   ;;  %s807_s19 = sadd.s32 4294967294, %s1079_s27  }
  0x11   : > { %p844_p6 = pnand %p843_p4, %p45_p1  ;;  %s1177_s20 = sadd.s32 1, %s1079_s27  }
  0x12   : > { %s232_s14 = sshll.u32 %s1465_s2, 4  ;;  %s28_s21 = ssub.s32 %s1079_s27, %s1177_s20  ;;  %s233_s14 = int_to_ptr.hbm [resolvable:$true] %s232_s14 }
  0x13   : > { %846 = dma.hbm_to_vmem [thread:$0]  (!%p844_p6), %s219_s30, 2304, %s221_s11, [#allocation7], %s1083_s17, %s1083_s17, %s1084_s18  }
  0x14   : > { %849 = dma.hbm_to_vmem [thread:$0]  (!%p844_p6), %s233_s14, 2304, %s235_s16, [#allocation7], %s1083_s17, %s1083_s17, %s1084_s18  }
  0x15   : > { %s31_s22 = sadd.s32 1, %s1075_s26  ;;  %p29_p7 = scmp.eq.s32.totalorder %s28_s21, 0 }
  0x16   : > { %p38_p8 = scmp.ne.s32.totalorder %s1075_s26, %s1071_s25  ;;  %p39_p9 = scmp.eq.s32.totalorder %s1079_s27, 0 }
  0x17   : > { %p44_p10 = scmp.ne.s32.totalorder %s1071_s25, %s1067_s24  ;;  %p194_p13 = scmp.eq.s32.totalorder %s1158_s8, 1 }
  0x18   : > { %s1188_s23 = scalar_select %p29_p7, %s1075_s26, %s31_s22  }
  0x19   : > { %p1190_p11 = por %p39_p9, %p38_p8  ;;  %p1196_p12 = por %p45_p1, %p44_p10 }
  0x1a   : > { %p200_p0 = scmp.eq.s32.totalorder %s807_s19, 1  ;;  %p860_p2 = scmp.lt.s32.totalorder %s1079_s27, 2 }
  0x1b   : > { %s260_s30 = sand.u32 1, %s1075_s26   ;;  %p1203_p4 = por %p194_p13, %p38_p8 }
  0x1c   : > { %p1207_p6 = por %p200_p0, %p44_p10  ;;  %s812_s12 = sshll.u32 %s260_s30, 4 }
  0x1d   : > { %s829_s13 = sshll.u32 %s1079_s27, 4  ;;  %s264_s17 = scalar_lea.vmem [#allocation3], %s812_s12 }
  0x1e   : > { %s269_s16 = scalar_lea.hbm %s1453_s0, %s829_s13  ;;  %s273_s18 = sshll.u32 %s264_s17, 4  ;;  %s274_s18 = int_to_ptr.vmem [resolvable:$true] %s273_s18 }
  0x1f   : > { %s271_s21 = sshll.u32 %s269_s16, 4  ;;  %p1217_p7 = pnand %p860_p2, %p1190_p11  ;;  %s272_s21 = int_to_ptr.hbm [resolvable:$true] %s271_s21 }
  0x20   : > { %s261_s22 = scalar_lea.sflag [#allocation4], %s260_s30  ;;  %s979_s1 = sshra.s32 %s272_s21, 4  ;;  %s980_s1 = int_to_ptr.hbm [resolvable:$true] %s979_s1 }
  0x21   : > { %s981_s2 = scalar_lea.hbm %s980_s1, 16  ;;  %p983_p9 = pneg %p1217_p7 }
  0x22   : > { %p982_p8 = scmp.ne.s32.totalorder %s980_s1, %s981_s2  ;;  %s986_s14 = scalar_lea.hbm %s1453_s0, 32 }
  0x23   : > { %p987_p11 = scmp.lt.s32.totalorder %s980_s1, %s1453_s0  ;;  %p988_p0 = scmp.lt.s32.totalorder %s986_s14, %s981_s2 }
  0x24   : > { %p984_p10 = pnand %p983_p9, %p982_p8 }
  0x25   : > { %p989_p2 = por %p988_p0, %p987_p11 }
  0x26   : > { %p985_p13 = pneg %p984_p10 }
  0x28   : > { %p990_p5 = pnand %p989_p2, %p985_p13 }
  0x2a   : > { %993 = shalt.err (!%p990_p5)
}
  0x2b   : > { %853 = dma.hbm_to_vmem [thread:$0]  (!%p1217_p7), %s272_s21, 256, %s274_s18, %s261_s22  }
  0x2c   : > { %282 = sbr.rel (%p1163_p3) target bundleno = 656 (0x290), region = 48  ;;  %s1234_s30 = sand.u32 (!%p1163_p3), 1, %s1071_s25  }
  0x2d   : > { %s816_s16 = sshll.u32 (!%p1163_p3), %s1234_s30, 4  ;;  %s285_s17 = scalar_lea.sflag (!%p1163_p3), [#allocation4], %s1234_s30 }
  0x2e   : > { %s288_s12 = scalar_lea.vmem (!%p1163_p3), [#allocation3], %s816_s16 }
  0x31   : > { %1054 = dma.done.wait (%p1196_p12), %s285_s17, 256  }
  0x32   : > { %1056 = vsyncadd (%p1196_p12), %s285_s17, 4294967040 }
  0x33   : > { %1058 = dma.done.wait (%p45_p1), [#allocation7], 4608  }
  0x34   : > { %1060 = vsyncadd (%p45_p1), [#allocation7], 4294962688  ;;  %v1246_v0 = vld [vmem:[%s288_s12] sm:$0xff]  ;;  %s1085_s1 = smov 113   ;;  %s1086_s2 = smov 111   ;;  %v1254_v1 = vld [vmem:[%s288_s12 + $0x8] sm:$0xff]  ;;  %v337_v3 = vlaneseq }
  0x35   : > { %406 = vrot.lane.b32.xlu1 %v1246_v0, %s1085_s1  ;;  %432 = vrot.lane.b32.xlu0 %v1246_v0, %s1086_s2  ;;  %s1087_s9 = smov 112   ;;  %s1088_s29 = smov 127   ;;  %v439_v8 = vld [vmem:[#allocation6 + $0x80] sm:$0xff]  ;;  %v440_v9 = vld [vmem:[#allocation6 + $0x88] sm:$0xff]  ;;  %v426_v12 = vld [vmem:[#allocation6 + $0x70] sm:$0xff]  ;;  %vm484_vm3 = vcmask 1043456  }
  0x36   : > { %419 = vrot.lane.b32.xlu2 %v1246_v0, %s1087_s9  ;;  %s1089_s18 = smov 15   ;;  %s1090_s21 = smov 1   ;;  %v1282_v6 = vand.u32 127, %v337_v3  ;;  %v413_v14 = vld [vmem:[#allocation6 + $0x60] sm:$0xff]  ;;  %v427_v18 = vld [vmem:[#allocation6 + $0x78] sm:$0xff]  ;;  %v414_v20 = vld [vmem:[#allocation6 + $0x68] sm:$0xff] }
  0x37   : > { %s1091_s19 = smov 17   ;;  %s1092_s22 = smov 16   ;;  %v387_v31 = vld [vmem:[#allocation6 + $0x40] sm:$0xff]  ;;  %v388_v32 = vld [vmem:[#allocation6 + $0x48] sm:$0xff]  ;;  %v400_v35 = vld [vmem:[#allocation6 + $0x50] sm:$0xff]  ;;  %v1093_v48 = vmov 0  }
  0x38   : > { %vm423_vm0 = vcmp.lt.s32.totalorder %v1282_v6, 112  ;;  %vm410_vm1 = vcmp.lt.s32.totalorder %v1282_v6, 113  ;;  %vm436_vm2 = vcmp.lt.s32.totalorder %v1282_v6, 111  ;;  %vm397_vm4 = vcmp.lt.s32.totalorder %v1282_v6, 127  ;;  %v401_v36 = vld [vmem:[#allocation6 + $0x58] sm:$0xff]  ;;  %v474_v45 = vld [vmem:[%s1457_s4] sm:$0xff]  ;;  %909 = vset.pattern.permute.xlu1 %v1093_v48  ;;  %910 = vset.pattern.permute.xlu0 %v1093_v48 }
  0x39   : > { %v389_v40 = vmul.f32 %v387_v31, %v1246_v0  ;;  %v390_v41 = vmul.f32 %v388_v32, %v1254_v1  ;;  %vm378_vm5 = vcmp.lt.s32.totalorder %v1282_v6, 1  ;;  %v381_v52 = vld [vmem:[#allocation6 + $0x30] sm:$0xff]  ;;  %vm365_vm6 = vcmp.lt.s32.totalorder %v1282_v6, 15  ;;  %v382_v53 = vld [vmem:[#allocation6 + $0x38] sm:$0xff]  ;;  %v368_v54 = vld [vmem:[#allocation6 + $0x20] sm:$0xff]  ;;  %s1029_s17 = scalar_lea.hbm %s1460_s7, 16 }
  0x3a   : > { %v369_v55 = vld [vmem:[#allocation6 + $0x28] sm:$0xff]  ;;  %vm339_vm7 = vcmp.lt.s32.totalorder %v1282_v6, 17  ;;  %vm352_vm8 = vcmp.lt.s32.totalorder %v1282_v6, 16  ;;  %vm480_vm9 = vcmask 588800   ;;  %v591_v48 = vld [vmem:[#allocation8 + $0x60] sm:$0xff] }
  0x3d   : > { %408 = vrot.lane.b32.xlu1 %v1254_v1, %s1085_s1  ;;  %434 = vrot.lane.b32.xlu0 %v1254_v1, %s1086_s2 }
  0x3e   : > { %421 = vrot.lane.b32.xlu2 %v1254_v1, %s1087_s9 }
  0x45   : > { %395 = vrot.lane.b32.xlu1 %v1254_v1, %s1088_s29  ;;  %393 = vrot.lane.b32.xlu0 %v1246_v0, %s1088_s29 }
  0x46   : > { %361 = vrot.lane.b32.xlu2 %v1246_v0, %s1089_s18 }
  0x4d   : > { %374 = vrot.lane.b32.xlu1 %v1246_v0, %s1090_s21  ;;  %363 = vrot.lane.b32.xlu0 %v1254_v1, %s1089_s18 }
  0x4e   : > { %376 = vrot.lane.b32.xlu2 %v1254_v1, %s1090_s21 }
  0x55   : > { %335 = vrot.lane.b32.xlu1 %v1254_v1, %s1091_s19  ;;  %333 = vrot.lane.b32.xlu0 %v1246_v0, %s1091_s19 }
  0x56   : > { %348 = vrot.lane.b32.xlu2 %v1246_v0, %s1092_s22 }
  0x5d   : > { %350 = vrot.lane.b32.xlu0 %v1254_v1, %s1092_s22  ;;  %477 = vperm.xlu1 %909, %v474_v45  }
  0x90   : > { %v420_v2 = vpop.permute.xlu2 %419 }
  0x98   : > { %v422_v7 = vpop.permute.xlu2 %421 }
  0x99   : > { %v424_v13 = vsel %vm423_vm0, %v420_v2, %v422_v7  ;;  %v425_v19 = vsel %vm423_vm0, %v422_v7, %v420_v2 }
  0x9a   : > { %v428_v24 = vmul.f32 %v426_v12, %v424_v13  ;;  %v429_v29 = vmul.f32 %v427_v18, %v425_v19 }
  0xa0   : > { %v362_v28 = vpop.permute.xlu2 %361 }
  0xa7   : > { %v407_v4 = vpop.permute.xlu1 %406  ;;  %v433_v5 = vpop.permute.xlu0 %432 }
  0xa8   : > { %v377_v51 = vpop.permute.xlu2 %376 }
  0xaf   : > { %v409_v10 = vpop.permute.xlu1 %408  ;;  %v435_v11 = vpop.permute.xlu0 %434 }
  0xb0   : > { %v411_v15 = vsel %vm410_vm1, %v407_v4, %v409_v10  ;;  %v437_v16 = vsel %vm436_vm2, %v433_v5, %v435_v11  ;;  %v438_v17 = vsel %vm436_vm2, %v435_v11, %v433_v5  ;;  %v412_v21 = vsel %vm410_vm1, %v409_v10, %v407_v4  ;;  %v349_v10 = vpop.permute.xlu2 %348  ;;  %v343_v11 = vld [vmem:[#allocation6 + $0x8] sm:$0xff] }
  0xb1   : > { %v441_v22 = vmul.f32 %v439_v8, %v437_v16  ;;  %v442_v23 = vmul.f32 %v440_v9, %v438_v17  ;;  %v415_v25 = vmul.f32 %v413_v14, %v411_v15  ;;  %v416_v30 = vmul.f32 %v414_v20, %v412_v21  ;;  %v342_v9 = vld [vmem:[#allocation6] sm:$0xff]  ;;  %v355_v14 = vld [vmem:[#allocation6 + $0x10] sm:$0xff]  ;;  %v356_v15 = vld [vmem:[#allocation6 + $0x18] sm:$0xff] }
  0xb3   : > { %v471_v26 = vpack.c.bf16 %v441_v22, %v441_v22  ;;  %v472_v27 = vpack.c.bf16 %v442_v23, %v442_v23  ;;  %v469_v39 = vpack.c.bf16 %v428_v24, %v415_v25  ;;  %v470_v44 = vpack.c.bf16 %v429_v29, %v416_v30  ;;  %v473_v25 = vld [vmem:[%s1456_s3] sm:$0xf] }
  0xb5   : > { %v486_v33 = vsel %vm484_vm3, %v471_v26, 0  ;;  %v489_v34 = vsel %vm484_vm3, %v472_v27, 0 }
  0xb6   : > { %494 = vmatpush.bf16.msra.mxu0 %v486_v33  ;;  %507 = vmatpush.bf16.msra.mxu1 %v489_v34 }
  0xb7   : > { %v396_v37 = vpop.permute.xlu1 %395  ;;  %v394_v38 = vpop.permute.xlu0 %393 }
  0xb8   : > { %v398_v42 = vsel %vm397_vm4, %v394_v38, %v396_v37  ;;  %v399_v43 = vsel %vm397_vm4, %v396_v37, %v394_v38  ;;  %v615_v38 = vld [vmem:[#allocation8 + $0x80] sm:$0xff] }
  0xb9   : > { %v402_v46 = vmul.f32 %v400_v35, %v398_v42  ;;  %v403_v47 = vmul.f32 %v401_v36, %v399_v43 }
  0xba   : > { %495 = vmatpush.bf16.msra.mxu0 %v469_v39  ;;  %508 = vmatpush.bf16.msra.mxu1 %v470_v44  ;;  %v616_v39 = vld [vmem:[#allocation8 + $0x88] sm:$0xff] }
  0xbb   : > { %v467_v49 = vpack.c.bf16 %v402_v46, %v389_v40  ;;  %v468_v50 = vpack.c.bf16 %v403_v47, %v390_v41 }
  0xbe   : > { %496 = vmatpush.bf16.msra.mxu0 %v467_v49  ;;  %509 = vmatpush.bf16.msra.mxu1 %v468_v50 }
  0xbf   : > { %v375_v56 = vpop.permute.xlu1 %374  ;;  %v364_v57 = vpop.permute.xlu0 %363 }
  0xc0   : > { %v379_v58 = vsel %vm378_vm5, %v375_v56, %v377_v51  ;;  %v380_v59 = vsel %vm378_vm5, %v377_v51, %v375_v56  ;;  %v366_v60 = vsel %vm365_vm6, %v362_v28, %v364_v57  ;;  %v367_v61 = vsel %vm365_vm6, %v364_v57, %v362_v28  ;;  %v592_v51 = vld [vmem:[#allocation8 + $0x68] sm:$0xff] }
  0xc1   : > { %v383_v62 = vmul.f32 %v381_v52, %v380_v59  ;;  %v384_v63 = vmul.f32 %v382_v53, %v379_v58  ;;  %v370_v2 = vmul.f32 %v368_v54, %v367_v61  ;;  %v371_v3 = vmul.f32 %v369_v55, %v366_v60  ;;  %v603_v54 = vld [vmem:[#allocation8 + $0x70] sm:$0xff]  ;;  %v604_v55 = vld [vmem:[#allocation8 + $0x78] sm:$0xff] }
  0xc2   : > { %v650_v60 = vld [vmem:[%s1459_s6] sm:$0xff] }
  0xc3   : > { %v465_v4 = vpack.c.bf16 %v383_v62, %v370_v2  ;;  %v466_v5 = vpack.c.bf16 %v384_v63, %v371_v3 }
  0xc5   : > { %497 = vmatpush.bf16.msra.mxu0 %v465_v4  ;;  %510 = vmatpush.bf16.msra.mxu1 %v466_v5 }
  0xc7   : > { %v334_v7 = vpop.permute.xlu0 %333  ;;  %v336_v8 = vpop.permute.xlu1 %335 }
  0xc8   : > { %v340_v12 = vsel %vm339_vm7, %v334_v7, %v336_v8  ;;  %v341_v13 = vsel %vm339_vm7, %v336_v8, %v334_v7  ;;  %v567_v7 = vld [vmem:[#allocation8 + $0x40] sm:$0xff]  ;;  %v579_v8 = vld [vmem:[#allocation8 + $0x50] sm:$0xff] }
  0xc9   : > { %v344_v19 = vmul.f32 %v342_v9, %v341_v13  ;;  %v345_v20 = vmul.f32 %v343_v11, %v340_v12  ;;  %v580_v9 = vld [vmem:[#allocation8 + $0x58] sm:$0xff]  ;;  %v568_v11 = vld [vmem:[#allocation8 + $0x48] sm:$0xff] }
  0xcf   : > { %v351_v16 = vpop.permute.xlu0 %350  ;;  %v478_v26 = vpop.permute.xlu1 %477 }
  0xd0   : > { %v353_v17 = vsel %vm352_vm8, %v349_v10, %v351_v16  ;;  %v354_v18 = vsel %vm352_vm8, %v351_v16, %v349_v10 }
  0xd1   : > { %v357_v21 = vmul.f32 %v355_v14, %v354_v18  ;;  %v358_v22 = vmul.f32 %v356_v15, %v353_v17 }
  0xd3   : > { %v463_v23 = vpack.c.bf16 %v357_v21, %v344_v19  ;;  %v464_v24 = vpack.c.bf16 %v358_v22, %v345_v20  ;;  %v549_v22 = vld [vmem:[#allocation8 + $0x20] sm:$0xff] }
  0xd5   : > { %498 = vmatpush.bf16.msra.mxu0 %v463_v23  ;;  %511 = vmatpush.bf16.msra.mxu1 %v464_v24  ;;  %v550_v23 = vld [vmem:[#allocation8 + $0x28] sm:$0xff] }
  0xd8   : > { %820 = vmatmul.msk.bf16.vlgmr.msra.gmra.mxu0 %vm480_vm9, %v473_v25  ;;  %821 = vmatmul.msk.bf16.vlgmr.msra.gmra.mxu1 %vm480_vm9, %v473_v25 }
 0x155   : > { %v500_v27 = vpop.f32.mrf.mxu0  ;;  %v513_v28 = vpop.f32.mrf.mxu1 }
 0x156   : > { %v501_v29 = vadd.f32 %v500_v27, %v478_v26  ;;  %v514_v30 = vadd.f32 %v513_v28, %v478_v26  ;;  %v561_v26 = vld [vmem:[#allocation8 + $0x30] sm:$0xff]  ;;  %v562_v27 = vld [vmem:[#allocation8 + $0x38] sm:$0xff] }
 0x158   : > { %911 = vtanh.f32 %v501_v29 }
 0x159   : > { %913 = vtanh.f32 %v514_v30 }
 0x15d   : > { %v502_v31 = vpop.f32.mrf.mxu0  ;;  %v515_v32 = vpop.f32.mrf.mxu1 }
 0x15e   : > { %v1336_v33 = vpop.eup %911 }
 0x15f   : > { %v1338_v34 = vpop.eup %913  ;;  %585 = vrot.lane.b32.xlu1 %v1336_v33, %s1085_s1  ;;  %609 = vrot.lane.b32.xlu2 %v1336_v33, %s1086_s2  ;;  %v569_v17 = vmul.f32 %v1336_v33, %v567_v7 }
 0x160   : > { %611 = vrot.lane.b32.xlu0 %v1338_v34, %s1086_s2  ;;  %v570_v18 = vmul.f32 %v1338_v34, %v568_v11  ;;  %s819_s2 = sshll.u32 %s1234_s30, 3 }
 0x167   : > { %599 = vrot.lane.b32.xlu1 %v1338_v34, %s1087_s9  ;;  %587 = vrot.lane.b32.xlu2 %v1338_v34, %s1085_s1 }
 0x168   : > { %597 = vrot.lane.b32.xlu0 %v1336_v33, %s1087_s9  ;;  %s830_s9 = sshll.u32 %s1158_s8, 3  ;;  %s702_s8 = scalar_lea.sflag [#allocation5], %s1234_s30 }
 0x16f   : > { %543 = vrot.lane.b32.xlu1 %v1336_v33, %s1089_s18  ;;  %573 = vrot.lane.b32.xlu2 %v1336_v33, %s1088_s29 }
 0x170   : > { %575 = vrot.lane.b32.xlu0 %v1338_v34, %s1088_s29 }
 0x177   : > { %557 = vrot.lane.b32.xlu1 %v1338_v34, %s1090_s21  ;;  %545 = vrot.lane.b32.xlu2 %v1338_v34, %s1089_s18 }
 0x178   : > { %555 = vrot.lane.b32.xlu0 %v1336_v33, %s1090_s21  ;;  %s713_s21 = scalar_lea.hbm %s1460_s7, %s830_s9 }
 0x179   : > { %s717_s13 = sshll.u32 %s713_s21, 4  ;;  %s718_s13 = int_to_ptr.hbm [resolvable:$true] %s717_s13 }
 0x17a   : > { %s1023_s14 = sshra.s32 %s718_s13, 4  ;;  %s1024_s14 = int_to_ptr.hbm [resolvable:$true] %s1023_s14 }
 0x17b   : > { %s1025_s15 = scalar_lea.hbm %s1024_s14, 8  ;;  %p1030_p12 = scmp.lt.s32.totalorder %s1024_s14, %s1460_s7 }
 0x17c   : > { %p1026_p1 = scmp.ne.s32.totalorder %s1024_s14, %s1025_s15  ;;  %p1031_p7 = scmp.lt.s32.totalorder %s1029_s17, %s1025_s15 }
 0x17e   : > { %p1027_p3 = pnand %p1026_p1, %p1203_p4  ;;  %p1032_p8 = por %p1031_p7, %p1030_p12 }
 0x17f   : > { %531 = vrot.lane.b32.xlu1 %v1336_v33, %s1092_s22  ;;  %519 = vrot.lane.b32.xlu2 %v1336_v33, %s1091_s19 }
 0x180   : > { %521 = vrot.lane.b32.xlu0 %v1338_v34, %s1091_s19  ;;  %s329_s19 = scalar_lea.vmem [#allocation9], %s819_s2  ;;  %p1028_p5 = pneg %p1027_p3 }
 0x182   : > { %p1033_p9 = pnand %p1032_p8, %p1028_p5 }
 0x187   : > { %533 = vrot.lane.b32.xlu2 %v1338_v34, %s1092_s22  ;;  %s715_s22 = sshll.u32 %s329_s19, 4  ;;  %s716_s22 = int_to_ptr.vmem [resolvable:$true] %s715_s22 }
 0x188   : > { %653 = vperm.xlu0 %910, %v650_v60  }
 0x1b9   : > { %v610_v35 = vpop.permute.xlu2 %609 }
 0x1c1   : > { %v588_v36 = vpop.permute.xlu2 %587 }
 0x1c9   : > { %v574_v41 = vpop.permute.xlu2 %573 }
 0x1d1   : > { %v586_v37 = vpop.permute.xlu1 %585  ;;  %v546_v3 = vpop.permute.xlu2 %545 }
 0x1d2   : > { %v612_v40 = vpop.permute.xlu0 %611  ;;  %v589_v52 = vsel %vm410_vm1, %v586_v37, %v588_v36  ;;  %v590_v53 = vsel %vm410_vm1, %v588_v36, %v586_v37 }
 0x1d3   : > { %v613_v42 = vsel %vm436_vm2, %v610_v35, %v612_v40  ;;  %v614_v43 = vsel %vm436_vm2, %v612_v40, %v610_v35  ;;  %v593_v61 = vmul.f32 %v591_v48, %v589_v52  ;;  %v594_v62 = vmul.f32 %v592_v51, %v590_v53 }
 0x1d4   : > { %v617_v44 = vmul.f32 %v615_v38, %v613_v42  ;;  %v618_v45 = vmul.f32 %v616_v39, %v614_v43  ;;  %v537_v38 = vld [vmem:[#allocation8 + $0x10] sm:$0xff]  ;;  %v538_v39 = vld [vmem:[#allocation8 + $0x18] sm:$0xff]  ;;  %v526_v42 = vld [vmem:[#allocation8 + $0x8] sm:$0xff] }
 0x1d6   : > { %v647_v46 = vpack.c.bf16 %v617_v44, %v617_v44  ;;  %v648_v47 = vpack.c.bf16 %v618_v45, %v618_v45 }
 0x1d8   : > { %v660_v49 = vsel %vm484_vm3, %v647_v46, 0  ;;  %v663_v50 = vsel %vm484_vm3, %v648_v47, 0 }
 0x1d9   : > { %668 = vmatpush.bf16.msra.mxu2 %v660_v49  ;;  %681 = vmatpush.bf16.msra.mxu3 %v663_v50  ;;  %v600_v56 = vpop.permute.xlu1 %599  ;;  %v520_v21 = vpop.permute.xlu2 %519 }
 0x1da   : > { %v598_v57 = vpop.permute.xlu0 %597 }
 0x1db   : > { %v601_v58 = vsel %vm423_vm0, %v598_v57, %v600_v56  ;;  %v602_v59 = vsel %vm423_vm0, %v600_v56, %v598_v57 }
 0x1dc   : > { %v605_v63 = vmul.f32 %v603_v54, %v601_v58  ;;  %v606_v2 = vmul.f32 %v604_v55, %v602_v59  ;;  %v649_v55 = vld [vmem:[%s1458_s5] sm:$0xf] }
 0x1de   : > { %v645_v4 = vpack.c.bf16 %v605_v63, %v593_v61  ;;  %v646_v5 = vpack.c.bf16 %v606_v2, %v594_v62 }
 0x1e0   : > { %669 = vmatpush.bf16.msra.mxu2 %v645_v4  ;;  %682 = vmatpush.bf16.msra.mxu3 %v646_v5 }
 0x1e1   : > { %v544_v10 = vpop.permute.xlu1 %543  ;;  %v534_v40 = vpop.permute.xlu2 %533 }
 0x1e2   : > { %v576_v12 = vpop.permute.xlu0 %575  ;;  %v547_v24 = vsel %vm365_vm6, %v544_v10, %v546_v3  ;;  %v548_v25 = vsel %vm365_vm6, %v546_v3, %v544_v10 }
 0x1e3   : > { %v577_v13 = vsel %vm397_vm4, %v574_v41, %v576_v12  ;;  %v578_v14 = vsel %vm397_vm4, %v576_v12, %v574_v41  ;;  %v551_v32 = vmul.f32 %v549_v22, %v548_v25  ;;  %v552_v33 = vmul.f32 %v550_v23, %v547_v24  ;;  %v525_v41 = vld [vmem:[#allocation8] sm:$0xff] }
 0x1e4   : > { %v581_v15 = vmul.f32 %v579_v8, %v577_v13  ;;  %v582_v16 = vmul.f32 %v580_v9, %v578_v14 }
 0x1e6   : > { %v643_v19 = vpack.c.bf16 %v581_v15, %v569_v17  ;;  %v644_v20 = vpack.c.bf16 %v582_v16, %v570_v18 }
 0x1e8   : > { %670 = vmatpush.bf16.msra.mxu2 %v643_v19  ;;  %683 = vmatpush.bf16.msra.mxu3 %v644_v20 }
 0x1e9   : > { %v558_v28 = vpop.permute.xlu1 %557 }
 0x1ea   : > { %v556_v29 = vpop.permute.xlu0 %555 }
 0x1eb   : > { %v559_v30 = vsel %vm378_vm5, %v556_v29, %v558_v28  ;;  %v560_v31 = vsel %vm378_vm5, %v558_v28, %v556_v29 }
 0x1ec   : > { %v563_v34 = vmul.f32 %v561_v26, %v560_v31  ;;  %v564_v35 = vmul.f32 %v562_v27, %v559_v30 }
 0x1ee   : > { %v641_v36 = vpack.c.bf16 %v563_v34, %v551_v32  ;;  %v642_v37 = vpack.c.bf16 %v564_v35, %v552_v33 }
 0x1f0   : > { %671 = vmatpush.bf16.msra.mxu2 %v641_v36  ;;  %684 = vmatpush.bf16.msra.mxu3 %v642_v37 }
 0x1f1   : > { %v532_v43 = vpop.permute.xlu1 %531 }
 0x1f2   : > { %v522_v44 = vpop.permute.xlu0 %521  ;;  %v535_v45 = vsel %vm352_vm8, %v532_v43, %v534_v40  ;;  %v536_v46 = vsel %vm352_vm8, %v534_v40, %v532_v43 }
 0x1f3   : > { %v523_v47 = vsel %vm339_vm7, %v520_v21, %v522_v44  ;;  %v524_v48 = vsel %vm339_vm7, %v522_v44, %v520_v21  ;;  %v539_v49 = vmul.f32 %v537_v38, %v536_v46  ;;  %v540_v50 = vmul.f32 %v538_v39, %v535_v45 }
 0x1f4   : > { %v527_v51 = vmul.f32 %v525_v41, %v524_v48  ;;  %v528_v52 = vmul.f32 %v526_v42, %v523_v47 }
 0x1f6   : > { %v639_v53 = vpack.c.bf16 %v539_v49, %v527_v51  ;;  %v640_v54 = vpack.c.bf16 %v540_v50, %v528_v52 }
 0x1f8   : > { %672 = vmatpush.bf16.msra.mxu2 %v639_v53  ;;  %685 = vmatpush.bf16.msra.mxu3 %v640_v54 }
 0x1fa   : > { %v654_v6 = vpop.permute.xlu0 %653 }
 0x1fb   : > { %822 = vmatmul.msk.bf16.vlgmr.msra.gmra.mxu2 %vm480_vm9, %v649_v55  ;;  %823 = vmatmul.msk.bf16.vlgmr.msra.gmra.mxu3 %vm480_vm9, %v649_v55 }
 0x27e   : > { %v674_v56 = vpop.f32.mrf.mxu2  ;;  %v687_v57 = vpop.f32.mrf.mxu3 }
 0x27f   : > { %v675_v58 = vadd.f32 %v674_v56, %v654_v6  ;;  %v688_v59 = vadd.f32 %v687_v57, %v654_v6 }
 0x281   : > { %v692_v60 = vadd.f32 %v688_v59, %v1254_v1  ;;  %v691_v61 = vadd.f32 %v675_v58, %v1246_v0 }
 0x283   : > { %915 = vtanh.f32 %v692_v60 }
 0x284   : > { %917 = vtanh.f32 %v691_v61 }
 0x286   : > { %v676_v62 = vpop.f32.mrf.mxu2  ;;  %v689_v63 = vpop.f32.mrf.mxu3 }
 0x289   : > { %v916_v2 = vpop.eup %915 }
 0x28a   : > { %v697_v3 = vrot.slane %v916_v2, 4  ;;  %v918_v1 = vpop.eup %917 }
 0x28c   : > { %v698_v0 = vsel %vm484_vm3, %v918_v1, %v697_v3 }
 0x28d   : > { %700 = vst [vmem:[%s329_s19] sm:$0xff] %v698_v0 }
 0x28e   : > { %1036 = shalt.err (!%p1033_p9)
}
 0x28f   : > { %841 = dma.vmem_to_hbm [thread:$0]  (%p1203_p4), %s716_s22, 128, %s718_s13, %s702_s8  }
 0x290 PF: > { %s729_s30 = sand.u32 1, %s1067_s24   ;;  %p1471_p10 = scmp.ge.s32.totalorder %s1079_s27, 2 }
 0x291   : > { %s730_s2 = scalar_lea.sflag [#allocation5], %s729_s30 }
 0x292   : > { %p855_p13 = pnand %p1471_p10, %p1207_p6 }
 0x294   : > { %p856_p11 = pneg %p855_p13 }
 0x296   : > { %1062 = dma.done.wait (%p856_p11), %s730_s2, 128  }
 0x297   : > { %1064 = vsyncadd (%p856_p11), %s730_s2, 4294967168  ;;  %p21_p0 = scmp.ge.s32.totalorder %s1177_s20, 4   ;;  %s1472_s24 = smov %s1071_s25 }
 0x298   : > { %s1473_s25 = smov %s1075_s26  ;;  %s1474_s26 = smov %s1188_s23 }
 0x299   : > { %s1475_s27 = smov %s1177_s20  ;;  %23 = sbr.rel (!%p21_p0) target bundleno = 9 (0x9), region = 101 }
 0x29e   :  { %736 = vsyncpa [#allocation4], 1 }
 0x29f   :  { %738 = vsyncpa [#allocation4 + $0x1], 1 }
 0x2a0   :  { %739 = vsyncpa [#allocation7], 1 }
 0x2a1   :  { %740 = vsyncpa [#allocation5], 1 }
 0x2a2   :  { %742 = vsyncpa [#allocation5 + $0x1], 1 }

</bundles_post_ra>
